<compile_context>
chip_gen: v6e
topology: v6e:2x2x1
jax: 0.10.0
libtpu: 0.0.40
codegen_flags: <defaults>
</compile_context>

<pallas_src>
import functools

import jax
import jax.numpy as jnp
from jax.experimental import pallas as pl
from jax.experimental.pallas import tpu as pltpu


def _hbm_copy_chunked_kernel(chunk_bounds, x_hbm_ref, o_hbm_ref, copy_sems):
    """Chunked HBM->HBM copy.

    chunk_bounds: static tuple of (start, size) pairs along the leading dim.
    Start every chunk DMA (one semaphore slot each), then wait on all of them,
    so N descriptors are in flight concurrently.
    """
    copies = []
    for i, (start, size) in enumerate(chunk_bounds):
        cp = pltpu.make_async_copy(
            x_hbm_ref.at[pl.ds(start, size)],
            o_hbm_ref.at[pl.ds(start, size)],
            copy_sems.at[i],
        )
        cp.start()
        copies.append(cp)
    for cp in copies:
        cp.wait()


def _hbm_copy_whole_kernel(x_hbm_ref, o_hbm_ref, copy_sem):
    """Fallback: single whole-array HBM->HBM DMA (used for 0-d / tiny inputs)."""
    cp = pltpu.make_async_copy(x_hbm_ref, o_hbm_ref, copy_sem)
    cp.start()
    cp.wait()


def pallas_hbm_copy(src_audio: jax.Array, num_chunks: int = 4) -> jax.Array:
    """Copy src_audio via N concurrent HBM->HBM DMAs issued from one Pallas kernel."""
    itemsize = jnp.dtype(src_audio.dtype).itemsize
    bytes_accessed = 2 * src_audio.size * itemsize  # read + write
    cost = pl.CostEstimate(
        flops=0, transcendentals=0, bytes_accessed=bytes_accessed
    )

    lead = src_audio.shape[0] if src_audio.ndim >= 1 else 0
    n = max(1, min(num_chunks, lead))

    if src_audio.ndim == 0 or n == 1:
        # Degenerate case: one whole-array DMA.
        return pl.pallas_call(
            _hbm_copy_whole_kernel,
            out_shape=jax.ShapeDtypeStruct(src_audio.shape, src_audio.dtype),
            in_specs=[pl.BlockSpec(memory_space=pl.ANY)],
            out_specs=pl.BlockSpec(memory_space=pl.ANY),
            scratch_shapes=[pltpu.SemaphoreType.DMA(())],
            cost_estimate=cost,
        )(src_audio)

    # Static, near-equal split of the leading dim into n chunks.
    base, rem = divmod(lead, n)
    chunk_bounds = []
    start = 0
    for i in range(n):
        size = base + (1 if i < rem else 0)
        chunk_bounds.append((start, size))
        start += size
    chunk_bounds = tuple(chunk_bounds)

    return pl.pallas_call(
        functools.partial(_hbm_copy_chunked_kernel, chunk_bounds),
        out_shape=jax.ShapeDtypeStruct(src_audio.shape, src_audio.dtype),
        in_specs=[pl.BlockSpec(memory_space=pl.ANY)],   # raw HBM ref, no auto-DMA
        out_specs=pl.BlockSpec(memory_space=pl.ANY),    # raw HBM ref, no auto-DMA
        scratch_shapes=[pltpu.SemaphoreType.DMA((n,))],  # one slot per chunk
        cost_estimate=cost,
    )(src_audio)


class Pitch_Transcriber:
    """JAX/Pallas mirror of the (empty) PyTorch Pitch_Transcriber."""

    def __init__(self, config=None):
        # Reference __init__ is `pass`: no parameters, nothing to initialize.
        self.config = config

    def forward(self, src_audio):
        # Reference forward is `return` (None) with zero compute.  Kept
        # dispatch-free per the performance review: any device work here would
        # be dead HBM traffic on every generation.
        del src_audio
        return

    __call__ = forward


if __name__ == "__main__":
    key = jax.random.PRNGKey(0)
    # Small, TPU-tile-friendly "audio feature" input: (batch=8, frames=64, feat=128).
    # Leading dim of 8 splits cleanly into 4 concurrent DMA chunks.
    src_audio = jax.random.normal(key, (8, 64, 128), dtype=jnp.float32)

    # 1) Module semantics: forward returns None, exactly like the PyTorch stub,
    #    and performs no device work.
    model = Pitch_Transcriber(config=None)
    out = model(src_audio)
    assert out is None

    # 2) Exercise the chunked Pallas HBM->HBM DMA kernel once and verify
    #    bit-exact correctness.
    kernel_out = jax.block_until_ready(pallas_hbm_copy(src_audio, num_chunks=4))
    assert kernel_out.shape == src_audio.shape
    assert kernel_out.dtype == src_audio.dtype
    assert bool(jnp.array_equal(kernel_out, src_audio))

    # 3) Also verify the single-DMA fallback path (n == 1).
    single = jax.block_until_ready(pallas_hbm_copy(src_audio, num_chunks=1))
    assert bool(jnp.array_equal(single, src_audio))

    print("KERNEL_OK")
</pallas_src>

<mosaic_0001>
module attributes {stable_mosaic.version = 11 : i64} {
  func.func @_hbm_copy_chunked_kernel(%arg0: memref<8x64x128xf32, #tpu.memory_space<any>>, %arg1: memref<8x64x128xf32, #tpu.memory_space<any>>, %arg2: memref<4x!tpu.dma_semaphore, #tpu.memory_space<semaphore_mem>>) attributes {dimension_semantics = [], scalar_prefetch = 0 : i64, scratch_operands = 1 : i64, tpu.core_type = #tpu.core_type<tc>} {
    %c0_i32 = arith.constant 0 : i32
    %c0_i32_0 = arith.constant 0 : i32
    %c0_i32_1 = arith.constant 0 : i32
    %c0_i32_2 = arith.constant 0 : i32
    %0 = tpu.memref_slice %arg0[%c0_i32_0, %c0_i32_1, %c0_i32_2] : memref<8x64x128xf32, #tpu.memory_space<any>> -> memref<2x64x128xf32, #tpu.memory_space<any>>
    %c0_i32_3 = arith.constant 0 : i32
    %c0_i32_4 = arith.constant 0 : i32
    %c0_i32_5 = arith.constant 0 : i32
    %1 = tpu.memref_slice %arg1[%c0_i32_3, %c0_i32_4, %c0_i32_5] : memref<8x64x128xf32, #tpu.memory_space<any>> -> memref<2x64x128xf32, #tpu.memory_space<any>>
    %2 = tpu.memref_slice %arg2[%c0_i32] : memref<4x!tpu.dma_semaphore, #tpu.memory_space<semaphore_mem>> -> memref<1x!tpu.dma_semaphore, #tpu.memory_space<semaphore_mem>>
    %3 = tpu.memref_squeeze %2 : memref<1x!tpu.dma_semaphore, #tpu.memory_space<semaphore_mem>> -> memref<!tpu.dma_semaphore, #tpu.memory_space<semaphore_mem>>
    tpu.enqueue_dma source(%0 : memref<2x64x128xf32, #tpu.memory_space<any>>) target(%1 : memref<2x64x128xf32, #tpu.memory_space<any>>) target_semaphore(%3 : memref<!tpu.dma_semaphore, #tpu.memory_space<semaphore_mem>>)
    %c1_i32 = arith.constant 1 : i32
    %c2_i32 = arith.constant 2 : i32
    %c0_i32_6 = arith.constant 0 : i32
    %c0_i32_7 = arith.constant 0 : i32
    %4 = tpu.memref_slice %arg0[%c2_i32, %c0_i32_6, %c0_i32_7] : memref<8x64x128xf32, #tpu.memory_space<any>> -> memref<2x64x128xf32, #tpu.memory_space<any>>
    %c2_i32_8 = arith.constant 2 : i32
    %c0_i32_9 = arith.constant 0 : i32
    %c0_i32_10 = arith.constant 0 : i32
    %5 = tpu.memref_slice %arg1[%c2_i32_8, %c0_i32_9, %c0_i32_10] : memref<8x64x128xf32, #tpu.memory_space<any>> -> memref<2x64x128xf32, #tpu.memory_space<any>>
    %6 = tpu.memref_slice %arg2[%c1_i32] : memref<4x!tpu.dma_semaphore, #tpu.memory_space<semaphore_mem>> -> memref<1x!tpu.dma_semaphore, #tpu.memory_space<semaphore_mem>>
    %7 = tpu.memref_squeeze %6 : memref<1x!tpu.dma_semaphore, #tpu.memory_space<semaphore_mem>> -> memref<!tpu.dma_semaphore, #tpu.memory_space<semaphore_mem>>
    tpu.enqueue_dma source(%4 : memref<2x64x128xf32, #tpu.memory_space<any>>) target(%5 : memref<2x64x128xf32, #tpu.memory_space<any>>) target_semaphore(%7 : memref<!tpu.dma_semaphore, #tpu.memory_space<semaphore_mem>>)
    %c2_i32_11 = arith.constant 2 : i32
    %c4_i32 = arith.constant 4 : i32
    %c0_i32_12 = arith.constant 0 : i32
    %c0_i32_13 = arith.constant 0 : i32
    %8 = tpu.memref_slice %arg0[%c4_i32, %c0_i32_12, %c0_i32_13] : memref<8x64x128xf32, #tpu.memory_space<any>> -> memref<2x64x128xf32, #tpu.memory_space<any>>
    %c4_i32_14 = arith.constant 4 : i32
    %c0_i32_15 = arith.constant 0 : i32
    %c0_i32_16 = arith.constant 0 : i32
    %9 = tpu.memref_slice %arg1[%c4_i32_14, %c0_i32_15, %c0_i32_16] : memref<8x64x128xf32, #tpu.memory_space<any>> -> memref<2x64x128xf32, #tpu.memory_space<any>>
    %10 = tpu.memref_slice %arg2[%c2_i32_11] : memref<4x!tpu.dma_semaphore, #tpu.memory_space<semaphore_mem>> -> memref<1x!tpu.dma_semaphore, #tpu.memory_space<semaphore_mem>>
    %11 = tpu.memref_squeeze %10 : memref<1x!tpu.dma_semaphore, #tpu.memory_space<semaphore_mem>> -> memref<!tpu.dma_semaphore, #tpu.memory_space<semaphore_mem>>
    tpu.enqueue_dma source(%8 : memref<2x64x128xf32, #tpu.memory_space<any>>) target(%9 : memref<2x64x128xf32, #tpu.memory_space<any>>) target_semaphore(%11 : memref<!tpu.dma_semaphore, #tpu.memory_space<semaphore_mem>>)
    %c3_i32 = arith.constant 3 : i32
    %c6_i32 = arith.constant 6 : i32
    %c0_i32_17 = arith.constant 0 : i32
    %c0_i32_18 = arith.constant 0 : i32
    %12 = tpu.memref_slice %arg0[%c6_i32, %c0_i32_17, %c0_i32_18] : memref<8x64x128xf32, #tpu.memory_space<any>> -> memref<2x64x128xf32, #tpu.memory_space<any>>
    %c6_i32_19 = arith.constant 6 : i32
    %c0_i32_20 = arith.constant 0 : i32
    %c0_i32_21 = arith.constant 0 : i32
    %13 = tpu.memref_slice %arg1[%c6_i32_19, %c0_i32_20, %c0_i32_21] : memref<8x64x128xf32, #tpu.memory_space<any>> -> memref<2x64x128xf32, #tpu.memory_space<any>>
    %14 = tpu.memref_slice %arg2[%c3_i32] : memref<4x!tpu.dma_semaphore, #tpu.memory_space<semaphore_mem>> -> memref<1x!tpu.dma_semaphore, #tpu.memory_space<semaphore_mem>>
    %15 = tpu.memref_squeeze %14 : memref<1x!tpu.dma_semaphore, #tpu.memory_space<semaphore_mem>> -> memref<!tpu.dma_semaphore, #tpu.memory_space<semaphore_mem>>
    tpu.enqueue_dma source(%12 : memref<2x64x128xf32, #tpu.memory_space<any>>) target(%13 : memref<2x64x128xf32, #tpu.memory_space<any>>) target_semaphore(%15 : memref<!tpu.dma_semaphore, #tpu.memory_space<semaphore_mem>>)
    %c0_i32_22 = arith.constant 0 : i32
    %c0_i32_23 = arith.constant 0 : i32
    %c0_i32_24 = arith.constant 0 : i32
    %c0_i32_25 = arith.constant 0 : i32
    %16 = tpu.memref_slice %arg0[%c0_i32_23, %c0_i32_24, %c0_i32_25] : memref<8x64x128xf32, #tpu.memory_space<any>> -> memref<2x64x128xf32, #tpu.memory_space<any>>
    %c0_i32_26 = arith.constant 0 : i32
    %c0_i32_27 = arith.constant 0 : i32
    %c0_i32_28 = arith.constant 0 : i32
    %17 = tpu.memref_slice %arg1[%c0_i32_26, %c0_i32_27, %c0_i32_28] : memref<8x64x128xf32, #tpu.memory_space<any>> -> memref<2x64x128xf32, #tpu.memory_space<any>>
    %18 = tpu.memref_slice %arg2[%c0_i32_22] : memref<4x!tpu.dma_semaphore, #tpu.memory_space<semaphore_mem>> -> memref<1x!tpu.dma_semaphore, #tpu.memory_space<semaphore_mem>>
    %19 = tpu.memref_squeeze %18 : memref<1x!tpu.dma_semaphore, #tpu.memory_space<semaphore_mem>> -> memref<!tpu.dma_semaphore, #tpu.memory_space<semaphore_mem>>
    tpu.wait_dma2 semaphore(%19 : memref<!tpu.dma_semaphore, #tpu.memory_space<semaphore_mem>>) src(%16 : memref<2x64x128xf32, #tpu.memory_space<any>>) dst(%17 : memref<2x64x128xf32, #tpu.memory_space<any>>)
    %c1_i32_29 = arith.constant 1 : i32
    %c2_i32_30 = arith.constant 2 : i32
    %c0_i32_31 = arith.constant 0 : i32
    %c0_i32_32 = arith.constant 0 : i32
    %20 = tpu.memref_slice %arg0[%c2_i32_30, %c0_i32_31, %c0_i32_32] : memref<8x64x128xf32, #tpu.memory_space<any>> -> memref<2x64x128xf32, #tpu.memory_space<any>>
    %c2_i32_33 = arith.constant 2 : i32
    %c0_i32_34 = arith.constant 0 : i32
    %c0_i32_35 = arith.constant 0 : i32
    %21 = tpu.memref_slice %arg1[%c2_i32_33, %c0_i32_34, %c0_i32_35] : memref<8x64x128xf32, #tpu.memory_space<any>> -> memref<2x64x128xf32, #tpu.memory_space<any>>
    %22 = tpu.memref_slice %arg2[%c1_i32_29] : memref<4x!tpu.dma_semaphore, #tpu.memory_space<semaphore_mem>> -> memref<1x!tpu.dma_semaphore, #tpu.memory_space<semaphore_mem>>
    %23 = tpu.memref_squeeze %22 : memref<1x!tpu.dma_semaphore, #tpu.memory_space<semaphore_mem>> -> memref<!tpu.dma_semaphore, #tpu.memory_space<semaphore_mem>>
    tpu.wait_dma2 semaphore(%23 : memref<!tpu.dma_semaphore, #tpu.memory_space<semaphore_mem>>) src(%20 : memref<2x64x128xf32, #tpu.memory_space<any>>) dst(%21 : memref<2x64x128xf32, #tpu.memory_space<any>>)
    %c2_i32_36 = arith.constant 2 : i32
    %c4_i32_37 = arith.constant 4 : i32
    %c0_i32_38 = arith.constant 0 : i32
    %c0_i32_39 = arith.constant 0 : i32
    %24 = tpu.memref_slice %arg0[%c4_i32_37, %c0_i32_38, %c0_i32_39] : memref<8x64x128xf32, #tpu.memory_space<any>> -> memref<2x64x128xf32, #tpu.memory_space<any>>
    %c4_i32_40 = arith.constant 4 : i32
    %c0_i32_41 = arith.constant 0 : i32
    %c0_i32_42 = arith.constant 0 : i32
    %25 = tpu.memref_slice %arg1[%c4_i32_40, %c0_i32_41, %c0_i32_42] : memref<8x64x128xf32, #tpu.memory_space<any>> -> memref<2x64x128xf32, #tpu.memory_space<any>>
    %26 = tpu.memref_slice %arg2[%c2_i32_36] : memref<4x!tpu.dma_semaphore, #tpu.memory_space<semaphore_mem>> -> memref<1x!tpu.dma_semaphore, #tpu.memory_space<semaphore_mem>>
    %27 = tpu.memref_squeeze %26 : memref<1x!tpu.dma_semaphore, #tpu.memory_space<semaphore_mem>> -> memref<!tpu.dma_semaphore, #tpu.memory_space<semaphore_mem>>
    tpu.wait_dma2 semaphore(%27 : memref<!tpu.dma_semaphore, #tpu.memory_space<semaphore_mem>>) src(%24 : memref<2x64x128xf32, #tpu.memory_space<any>>) dst(%25 : memref<2x64x128xf32, #tpu.memory_space<any>>)
    %c3_i32_43 = arith.constant 3 : i32
    %c6_i32_44 = arith.constant 6 : i32
    %c0_i32_45 = arith.constant 0 : i32
    %c0_i32_46 = arith.constant 0 : i32
    %28 = tpu.memref_slice %arg0[%c6_i32_44, %c0_i32_45, %c0_i32_46] : memref<8x64x128xf32, #tpu.memory_space<any>> -> memref<2x64x128xf32, #tpu.memory_space<any>>
    %c6_i32_47 = arith.constant 6 : i32
    %c0_i32_48 = arith.constant 0 : i32
    %c0_i32_49 = arith.constant 0 : i32
    %29 = tpu.memref_slice %arg1[%c6_i32_47, %c0_i32_48, %c0_i32_49] : memref<8x64x128xf32, #tpu.memory_space<any>> -> memref<2x64x128xf32, #tpu.memory_space<any>>
    %30 = tpu.memref_slice %arg2[%c3_i32_43] : memref<4x!tpu.dma_semaphore, #tpu.memory_space<semaphore_mem>> -> memref<1x!tpu.dma_semaphore, #tpu.memory_space<semaphore_mem>>
    %31 = tpu.memref_squeeze %30 : memref<1x!tpu.dma_semaphore, #tpu.memory_space<semaphore_mem>> -> memref<!tpu.dma_semaphore, #tpu.memory_space<semaphore_mem>>
    tpu.wait_dma2 semaphore(%31 : memref<!tpu.dma_semaphore, #tpu.memory_space<semaphore_mem>>) src(%28 : memref<2x64x128xf32, #tpu.memory_space<any>>) dst(%29 : memref<2x64x128xf32, #tpu.memory_space<any>>)
    return
  }
}

</mosaic_0001>

<bundles_post_ra>
// kernel: tpu_custom_call.1
= control target key start
LH: loop header
LB: loop body
LE: loop exit
PB: predicated region body
PF: predicated region fallthrough
CT: control target
= control target key end

     0   :  { %s98_s9 = smov [#allocation2]   ;;  %s99_s10 = smov 131072   ;;  %s138_s0 = inlined_call_operand.hbm [shape: f32[8,64,128], index: 0, kind: input, shape index: {}]   ;;  %s139_s1 = inlined_call_operand.hbm [shape: f32[8,64,128], index: 1, kind: output, shape index: {}]  }
   0x1   :  { %s13_s8 = scalar_lea.hbm %s138_s0, 2048  ;;  %s100_s11 = smov 0  }
   0x2   :  { %12 = dma.general %s138_s0, 2048, %s139_s1, %s98_s9, %s99_s10, [#allocation4], %s100_s11, 0  }
   0x3   :  { %s14_s18 = scalar_lea.hbm %s139_s1, 2048  ;;  %s101_s19 = smov [#allocation2 + $0x1]  }
   0x4   :  { %22 = dma.general %s13_s8, 2048, %s14_s18, %s101_s19, %s99_s10, [#allocation6], %s100_s11, 0  }
   0x5   :  { %s23_s22 = scalar_lea.hbm %s138_s0, 4096  ;;  %s24_s25 = scalar_lea.hbm %s139_s1, 4096 }
   0x6   :  { %s33_s28 = scalar_lea.hbm %s138_s0, 6144  ;;  %s102_s29 = smov [#allocation2 + $0x2]  }
   0x7   :  { %32 = dma.general %s23_s22, 2048, %s24_s25, %s102_s29, %s99_s10, [#allocation8], %s100_s11, 0  }
   0x8   :  { %s34_s3 = scalar_lea.hbm %s139_s1, 6144  ;;  %s103_s4 = smov [#allocation2 + $0x3]  }
   0x9   :  { %42 = dma.general %s33_s28, 2048, %s34_s3, %s103_s4, %s99_s10, [#allocation10], %s100_s11, 0  }
   0xa   :  { %90 = dma.done.wait [#allocation2], 2048 }
   0xb   :  { %91 = vsyncadd [#allocation2], 4294965248 }
   0xc   :  { %92 = dma.done.wait [#allocation2 + $0x1], 2048 }
   0xd   :  { %93 = vsyncadd [#allocation2 + $0x1], 4294965248 }
   0xe   :  { %94 = dma.done.wait [#allocation2 + $0x2], 2048 }
   0xf   :  { %95 = vsyncadd [#allocation2 + $0x2], 4294965248 }
  0x10   :  { %96 = dma.done.wait [#allocation2 + $0x3], 2048 }
  0x11   :  { %97 = vsyncadd [#allocation2 + $0x3], 4294965248 }
  0x12   :  { %53 = vsyncmov [#allocation2] }
  0x15   :  { %s54_s5 = vpop.sfrf %53 }
  0x16   :  { %p80_p0 = scmp.ne.s32.totalorder %s54_s5, 0 }
  0x18   :  { %58 = shalt.err (%p80_p0)  }
  0x19   :  { %60 = vsyncmov [#allocation2 + $0x1] }
  0x1c   :  { %s61_s0 = vpop.sfrf %60 }
  0x1d   :  { %p81_p1 = scmp.ne.s32.totalorder %s61_s0, 0 }
  0x1f   :  { %65 = shalt.err (%p81_p1)  }
  0x20   :  { %67 = vsyncmov [#allocation2 + $0x2] }
  0x23   :  { %s68_s1 = vpop.sfrf %67 }
  0x24   :  { %p82_p2 = scmp.ne.s32.totalorder %s68_s1, 0 }
  0x26   :  { %72 = shalt.err (%p82_p2)  }
  0x27   :  { %74 = vsyncmov [#allocation2 + $0x3] }
  0x2a   :  { %s75_s6 = vpop.sfrf %74 }
  0x2b   :  { %p83_p3 = scmp.ne.s32.totalorder %s75_s6, 0 }
  0x2d   :  { %79 = shalt.err (%p83_p3)  }

</bundles_post_ra>
